<compile_context>
chip_gen: v7x
topology: tpu7x:2x2x1
jax: 0.10.0
libtpu: 0.0.40
codegen_flags: <defaults>
</compile_context>

<pallas_src>
import functools

import jax
import jax.numpy as jnp
from jax import lax
from jax.experimental import pallas as pl
from jax.experimental.pallas import tpu as pltpu


def _attention_kernel(x_ref, w1_ref, b1_ref, w2_ref, b2_ref, cw_ref, cb_ref,
                      out_ref, wts_ref, *, training):
    bb, s, h = x_ref.shape
    c = cb_ref.shape[-1]

    # bf16 MXU inputs, f32 accumulation.
    x_bf = x_ref[...].astype(jnp.bfloat16)                  # (bb, s, h)
    x2 = x_bf.reshape(bb * s, h)                            # shared-weight MLP rows

    # --- projection MLP: Linear(H,256) -> ReLU -> Linear(256,C) ---
    h1 = jnp.dot(x2, w1_ref[...], preferred_element_type=jnp.float32) + b1_ref[...]
    h1 = jnp.maximum(h1, 0.0)
    energy = jnp.dot(h1.astype(jnp.bfloat16), w2_ref[...],
                     preferred_element_type=jnp.float32) + b2_ref[...]
    energy = energy.reshape(bb, s, c)                       # (bb, s, c)

    # --- softmax over the sequence axis (torch dim=1) ---
    m = jnp.max(energy, axis=1, keepdims=True)
    e = jnp.exp(energy - m)
    denom = jnp.sum(e, axis=1, keepdims=True)
    w = e * pl.reciprocal(denom, approx=False)              # (bb, s, c), f32

    # out[b,c] = sum_s w[b,s,c] * (sum_h x[b,s,h] * M[...,c,h]) + cb[c]
    if training:
        # cw_ref holds the dropout-fused class weight: (bb, C, H), bf16.
        y = lax.dot_general(
            x_bf, cw_ref[...],
            dimension_numbers=(((2,), (2,)), ((0,), (0,))),
            preferred_element_type=jnp.float32)             # (bb, s, c)
    else:
        # cw_ref is the shared class weight: (C, H), bf16 — one big matmul.
        y = lax.dot_general(
            x2, cw_ref[...],
            dimension_numbers=(((1,), (1,)), ((), ())),
            preferred_element_type=jnp.float32)             # (bb*s, c)
        y = y.reshape(bb, s, c)

    out_ref[...] = (jnp.sum(w * y, axis=1) + cb_ref[...]).astype(out_ref.dtype)
    # Emit weights already transposed to (bb, c, s): matches the PyTorch
    # (B, C, S) return convention with no wrapper transpose.
    wts_ref[...] = jnp.transpose(w, (0, 2, 1)).astype(wts_ref.dtype)


def _pick_block_b(batch, seq):
    """Batch elements per grid step; target ~1024 MXU rows (= block_b * seq)."""
    target_rows = 1024
    max_bb = max(1, target_rows // max(seq, 1))
    if batch <= max_bb:
        return batch
    # Prefer a multiple-of-8 divisor so the (block_b, C) output block stays
    # sublane-tile aligned when block_b < batch.
    start = max_bb - (max_bb % 8)
    for bb in range(start, 0, -8):
        if bb > 0 and batch % bb == 0:
            return bb
    for bb in range(max_bb, 0, -1):
        if batch % bb == 0:
            return bb
    return 1


def multi_class_attention(x, params, *, training=True, dropout_mask=None,
                          dropout_rng=None, block_b=None):
    """x: (B, S, H) float32. Returns (output (B, C), weights (B, C, S)).

    training=True matches the PyTorch module (its inline nn.Dropout(0.5) is
    always active); training=False disables dropout for deterministic checks.
    """
    B, S, H = x.shape
    C = params["class_bias"].shape[-1]
    K = params["w1"].shape[-1]

    bb = block_b if block_b is not None else _pick_block_b(B, S)
    assert B % bb == 0, "block_b must divide the batch size"

    # Pre-cast shared matmul operands to bf16 once on the host; biases stay f32.
    w1 = params["w1"].astype(jnp.bfloat16)                  # (H, K)
    b1 = params["b1"].reshape(1, K).astype(jnp.float32)
    w2 = params["w2"].astype(jnp.bfloat16)                  # (K, C)
    b2 = params["b2"].reshape(1, C).astype(jnp.float32)
    cw = params["class_weight"].astype(jnp.float32)         # (C, H)
    cb = params["class_bias"].reshape(1, C).astype(jnp.float32)

    in_specs = [
        pl.BlockSpec((bb, S, H), lambda b: (b, 0, 0)),      # x
        pl.BlockSpec((H, K), lambda b: (0, 0)),             # w1
        pl.BlockSpec((1, K), lambda b: (0, 0)),             # b1
        pl.BlockSpec((K, C), lambda b: (0, 0)),             # w2
        pl.BlockSpec((1, C), lambda b: (0, 0)),             # b2
    ]
    args = [x.astype(jnp.float32), w1, b1, w2, b2]

    if training:
        if dropout_mask is None:
            if dropout_rng is None:
                dropout_rng = jax.random.PRNGKey(0)
            dropout_mask = jax.random.bernoulli(dropout_rng, 0.5, (B, C, H))
        # Fuse the inverted-dropout scale (1/(1-p) = 2.0) and class_weight into
        # a single bf16 per-batch operand (halves the mask DMA vs f32 and lets
        # the kernel skip the feats materialization entirely).
        mcw = (dropout_mask.astype(jnp.float32) * (2.0 * cw[None])).astype(jnp.bfloat16)
        in_specs.append(pl.BlockSpec((bb, C, H), lambda b: (b, 0, 0)))
        args.append(mcw)
    else:
        in_specs.append(pl.BlockSpec((C, H), lambda b: (0, 0)))
        args.append(cw.astype(jnp.bfloat16))

    in_specs.append(pl.BlockSpec((1, C), lambda b: (0, 0)))  # class_bias
    args.append(cb)

    out, wts = pl.pallas_call(
        functools.partial(_attention_kernel, training=training),
        grid=(B // bb,),
        in_specs=in_specs,
        out_specs=[
            pl.BlockSpec((bb, C), lambda b: (b, 0)),        # output (B, C)
            pl.BlockSpec((bb, C, S), lambda b: (b, 0, 0)),  # weights (B, C, S)
        ],
        out_shape=(
            jax.ShapeDtypeStruct((B, C), jnp.float32),
            jax.ShapeDtypeStruct((B, C, S), jnp.float32),
        ),
        compiler_params=pltpu.CompilerParams(
            dimension_semantics=("parallel",)),             # v7x: 2 TCs split the batch
    )(*args)
    return out, wts


def _reference(x, params, dropout_mask=None):
    """Pure-JAX f32 reference of the PyTorch forward (mask given => dropout)."""
    h = jnp.maximum(jnp.einsum("bsh,hk->bsk", x, params["w1"]) + params["b1"], 0.0)
    energy = jnp.einsum("bsk,kc->bsc", h, params["w2"]) + params["b2"]
    w = jax.nn.softmax(energy, axis=1)                      # (B, S, C)
    w_t = jnp.transpose(w, (0, 2, 1))                       # (B, C, S)
    feats = jnp.einsum("bcs,bsh->bch", w_t, x)              # (B, C, H)
    if dropout_mask is not None:
        feats = feats * dropout_mask * 2.0
    out = jnp.sum(feats * params["class_weight"][None], axis=-1) + params["class_bias"]
    return out, w_t


if __name__ == "__main__":
    B, S, H, C = 2, 8, 32, 4

    key = jax.random.PRNGKey(0)
    k_x, k_w1, k_b1, k_w2, k_b2, k_cw, k_cb, k_drop = jax.random.split(key, 8)

    x = jax.random.normal(k_x, (B, S, H), dtype=jnp.float32)
    params = {
        "w1": jax.random.normal(k_w1, (H, 256), dtype=jnp.float32) * 0.05,
        "b1": jax.random.normal(k_b1, (256,), dtype=jnp.float32) * 0.05,
        "w2": jax.random.normal(k_w2, (256, C), dtype=jnp.float32) * 0.05,
        "b2": jax.random.normal(k_b2, (C,), dtype=jnp.float32) * 0.05,
        "class_weight": jax.random.normal(k_cw, (C, H), dtype=jnp.float32),
        "class_bias": jax.random.normal(k_cb, (C,), dtype=jnp.float32),
    }

    # --- eval mode (dropout off) vs pure-JAX f32 reference (bf16-MXU tolerance) ---
    out_eval, wts_eval = multi_class_attention(x, params, training=False)
    jax.block_until_ready((out_eval, wts_eval))
    out_ref, wts_ref = _reference(x, params, dropout_mask=None)
    assert out_eval.shape == (B, C) and wts_eval.shape == (B, C, S)
    assert jnp.allclose(wts_eval, wts_ref, atol=1e-2, rtol=1e-2), "eval weights mismatch"
    assert jnp.allclose(out_eval, out_ref, atol=2e-1, rtol=5e-2), "eval output mismatch"

    # --- training mode (dropout p=0.5): same host-generated mask in kernel & ref ---
    keep = jax.random.bernoulli(k_drop, 0.5, (B, C, H)).astype(jnp.float32)
    out_tr, wts_tr = multi_class_attention(x, params, training=True, dropout_mask=keep)
    jax.block_until_ready((out_tr, wts_tr))
    out_tr_ref, wts_tr_ref = _reference(x, params, dropout_mask=keep)
    assert jnp.allclose(wts_tr, wts_tr_ref, atol=1e-2, rtol=1e-2), "train weights mismatch"
    assert jnp.allclose(out_tr, out_tr_ref, atol=2e-1, rtol=5e-2), "train output mismatch"

    print("KERNEL_OK")
</pallas_src>

<mosaic_0001>
module attributes {stable_mosaic.version = 11 : i64} {
  func.func @_attention_kernel(%arg0: i32, %arg1: memref<2x8x32xf32, #tpu.memory_space<vmem>>, %arg2: memref<32x256xbf16, #tpu.memory_space<vmem>>, %arg3: memref<1x256xf32, #tpu.memory_space<vmem>>, %arg4: memref<256x4xbf16, #tpu.memory_space<vmem>>, %arg5: memref<1x4xf32, #tpu.memory_space<vmem>>, %arg6: memref<4x32xbf16, #tpu.memory_space<vmem>>, %arg7: memref<1x4xf32, #tpu.memory_space<vmem>>, %arg8: memref<2x4xf32, #tpu.memory_space<vmem>>, %arg9: memref<2x4x8xf32, #tpu.memory_space<vmem>>) attributes {dimension_semantics = [#tpu.dimension_semantics<parallel>], iteration_bounds = array<i64: 1>, scalar_prefetch = 0 : i64, scratch_operands = 0 : i64, tpu.core_type = #tpu.core_type<tc>, window_params = [{transform_indices = @transform_0, window_bounds = array<i64: 2, 8, 32>}, {pipeline_mode = #tpu.pipeline_mode<synchronous>, transform_indices = @transform_1, window_bounds = array<i64: 32, 256>}, {pipeline_mode = #tpu.pipeline_mode<synchronous>, transform_indices = @transform_2, window_bounds = array<i64: 1, 256>}, {pipeline_mode = #tpu.pipeline_mode<synchronous>, transform_indices = @transform_3, window_bounds = array<i64: 256, 4>}, {pipeline_mode = #tpu.pipeline_mode<synchronous>, transform_indices = @transform_4, window_bounds = array<i64: 1, 4>}, {pipeline_mode = #tpu.pipeline_mode<synchronous>, transform_indices = @transform_5, window_bounds = array<i64: 4, 32>}, {pipeline_mode = #tpu.pipeline_mode<synchronous>, transform_indices = @transform_6, window_bounds = array<i64: 1, 4>}, {transform_indices = @transform_7, window_bounds = array<i64: 2, 4>}, {transform_indices = @transform_8, window_bounds = array<i64: 2, 4, 8>}]} {
    %c0 = arith.constant 0 : index
    %c0_0 = arith.constant 0 : index
    %c0_1 = arith.constant 0 : index
    %0 = vector.load %arg1[%c0, %c0_0, %c0_1] : memref<2x8x32xf32, #tpu.memory_space<vmem>>, vector<2x8x32xf32>
    %1 = arith.truncf %0 : vector<2x8x32xf32> to vector<2x8x32xbf16>
    %2 = vector.shape_cast %1 : vector<2x8x32xbf16> to vector<16x32xbf16>
    %c0_2 = arith.constant 0 : index
    %c0_3 = arith.constant 0 : index
    %3 = vector.load %arg2[%c0_2, %c0_3] : memref<32x256xbf16, #tpu.memory_space<vmem>>, vector<32x256xbf16>
    %cst = arith.constant dense<0.000000e+00> : vector<16x256xf32>
    %4 = tpu.matmul %2, %3, %cst {dimension_numbers = #tpu.dot_dimension_numbers<[1], [0], [0], [1], [0, 0, 1, 1], [], []>} : vector<16x32xbf16>, vector<32x256xbf16>, vector<16x256xf32> -> vector<16x256xf32>
    %c0_4 = arith.constant 0 : index
    %c0_5 = arith.constant 0 : index
    %5 = vector.load %arg3[%c0_4, %c0_5] : memref<1x256xf32, #tpu.memory_space<vmem>>, vector<1x256xf32>
    %6 = vector.broadcast %5 : vector<1x256xf32> to vector<16x256xf32>
    %7 = arith.addf %4, %6 : vector<16x256xf32>
    %cst_6 = arith.constant 0.000000e+00 : f32
    %8 = vector.broadcast %cst_6 : f32 to vector<16x256xf32>
    %9 = arith.maximumf %7, %8 : vector<16x256xf32>
    %10 = arith.truncf %9 : vector<16x256xf32> to vector<16x256xbf16>
    %c0_7 = arith.constant 0 : index
    %c0_8 = arith.constant 0 : index
    %11 = vector.load %arg4[%c0_7, %c0_8] : memref<256x4xbf16, #tpu.memory_space<vmem>>, vector<256x4xbf16>
    %cst_9 = arith.constant dense<0.000000e+00> : vector<16x4xf32>
    %12 = tpu.matmul %10, %11, %cst_9 {dimension_numbers = #tpu.dot_dimension_numbers<[1], [0], [0], [1], [0, 0, 1, 1], [], []>} : vector<16x256xbf16>, vector<256x4xbf16>, vector<16x4xf32> -> vector<16x4xf32>
    %c0_10 = arith.constant 0 : index
    %c0_11 = arith.constant 0 : index
    %13 = vector.load %arg5[%c0_10, %c0_11] : memref<1x4xf32, #tpu.memory_space<vmem>>, vector<1x4xf32>
    %14 = vector.broadcast %13 : vector<1x4xf32> to vector<16x4xf32>
    %15 = arith.addf %12, %14 : vector<16x4xf32>
    %16 = vector.shape_cast %15 : vector<16x4xf32> to vector<2x8x4xf32>
    %cst_12 = arith.constant dense<0xFF800000> : vector<2x4xf32>
    %17 = vector.multi_reduction <maximumf>, %16, %cst_12 [1] : vector<2x8x4xf32> to vector<2x4xf32>
    %18 = vector.shape_cast %17 : vector<2x4xf32> to vector<2x1x4xf32>
    %19 = vector.broadcast %18 : vector<2x1x4xf32> to vector<2x8x4xf32>
    %20 = arith.subf %16, %19 : vector<2x8x4xf32>
    %21 = math.exp %20 : vector<2x8x4xf32>
    %cst_13 = arith.constant dense<0.000000e+00> : vector<2x4xf32>
    %22 = vector.multi_reduction <add>, %21, %cst_13 [1] : vector<2x8x4xf32> to vector<2x4xf32>
    %23 = vector.shape_cast %22 : vector<2x4xf32> to vector<2x1x4xf32>
    %24 = tpu.reciprocal %23 : vector<2x1x4xf32> -> vector<2x1x4xf32>
    %25 = vector.broadcast %24 : vector<2x1x4xf32> to vector<2x8x4xf32>
    %26 = arith.mulf %21, %25 : vector<2x8x4xf32>
    %c0_14 = arith.constant 0 : index
    %c0_15 = arith.constant 0 : index
    %27 = vector.load %arg6[%c0_14, %c0_15] : memref<4x32xbf16, #tpu.memory_space<vmem>>, vector<4x32xbf16>
    %cst_16 = arith.constant dense<0.000000e+00> : vector<16x4xf32>
    %28 = tpu.matmul %2, %27, %cst_16 {dimension_numbers = #tpu.dot_dimension_numbers<[1], [1], [0], [0], [0, 0, 1, 0], [], []>} : vector<16x32xbf16>, vector<4x32xbf16>, vector<16x4xf32> -> vector<16x4xf32>
    %29 = vector.shape_cast %28 : vector<16x4xf32> to vector<2x8x4xf32>
    %30 = arith.mulf %26, %29 : vector<2x8x4xf32>
    %cst_17 = arith.constant dense<0.000000e+00> : vector<2x4xf32>
    %31 = vector.multi_reduction <add>, %30, %cst_17 [1] : vector<2x8x4xf32> to vector<2x4xf32>
    %c0_18 = arith.constant 0 : index
    %c0_19 = arith.constant 0 : index
    %32 = vector.load %arg7[%c0_18, %c0_19] : memref<1x4xf32, #tpu.memory_space<vmem>>, vector<1x4xf32>
    %33 = vector.broadcast %32 : vector<1x4xf32> to vector<2x4xf32>
    %34 = arith.addf %31, %33 : vector<2x4xf32>
    %c0_20 = arith.constant 0 : index
    %c0_21 = arith.constant 0 : index
    %35 = vector.load %arg8[%c0_20, %c0_21] : memref<2x4xf32, #tpu.memory_space<vmem>>, vector<2x4xf32>
    tpu.vector_store %arg8[%c0_20, %c0_21], %34 {strides = array<i32>} : memref<2x4xf32, #tpu.memory_space<vmem>>, vector<2x4xf32>,
    %36 = tpu.transpose %26, [0, 2, 1] : vector<2x8x4xf32> -> vector<2x4x8xf32>
    %c0_22 = arith.constant 0 : index
    %c0_23 = arith.constant 0 : index
    %c0_24 = arith.constant 0 : index
    %37 = vector.load %arg9[%c0_22, %c0_23, %c0_24] : memref<2x4x8xf32, #tpu.memory_space<vmem>>, vector<2x4x8xf32>
    tpu.vector_store %arg9[%c0_22, %c0_23, %c0_24], %36 {strides = array<i32>} : memref<2x4x8xf32, #tpu.memory_space<vmem>>, vector<2x4x8xf32>,
    return
  }
  func.func @transform_0(%arg0: i32) -> (i32, i32, i32) {
    %c0_i32 = arith.constant 0 : i32
    %c0_i32_0 = arith.constant 0 : i32
    %c0_i32_1 = arith.constant 0 : i32
    return %arg0, %c0_i32, %c0_i32_0 : i32, i32, i32
  }
  func.func @transform_1(%arg0: i32) -> (i32, i32) {
    %c0_i32 = arith.constant 0 : i32
    %c0_i32_0 = arith.constant 0 : i32
    %c0_i32_1 = arith.constant 0 : i32
    return %c0_i32, %c0_i32_0 : i32, i32
  }
  func.func @transform_2(%arg0: i32) -> (i32, i32) {
    %c0_i32 = arith.constant 0 : i32
    %c0_i32_0 = arith.constant 0 : i32
    %c0_i32_1 = arith.constant 0 : i32
    return %c0_i32, %c0_i32_0 : i32, i32
  }
  func.func @transform_3(%arg0: i32) -> (i32, i32) {
    %c0_i32 = arith.constant 0 : i32
    %c0_i32_0 = arith.constant 0 : i32
    %c0_i32_1 = arith.constant 0 : i32
    return %c0_i32, %c0_i32_0 : i32, i32
  }
  func.func @transform_4(%arg0: i32) -> (i32, i32) {
    %c0_i32 = arith.constant 0 : i32
    %c0_i32_0 = arith.constant 0 : i32
    %c0_i32_1 = arith.constant 0 : i32
    return %c0_i32, %c0_i32_0 : i32, i32
  }
  func.func @transform_5(%arg0: i32) -> (i32, i32) {
    %c0_i32 = arith.constant 0 : i32
    %c0_i32_0 = arith.constant 0 : i32
    %c0_i32_1 = arith.constant 0 : i32
    return %c0_i32, %c0_i32_0 : i32, i32
  }
  func.func @transform_6(%arg0: i32) -> (i32, i32) {
    %c0_i32 = arith.constant 0 : i32
    %c0_i32_0 = arith.constant 0 : i32
    %c0_i32_1 = arith.constant 0 : i32
    return %c0_i32, %c0_i32_0 : i32, i32
  }
  func.func @transform_7(%arg0: i32) -> (i32, i32) {
    %c0_i32 = arith.constant 0 : i32
    %c0_i32_0 = arith.constant 0 : i32
    return %arg0, %c0_i32 : i32, i32
  }
  func.func @transform_8(%arg0: i32) -> (i32, i32, i32) {
    %c0_i32 = arith.constant 0 : i32
    %c0_i32_0 = arith.constant 0 : i32
    %c0_i32_1 = arith.constant 0 : i32
    return %arg0, %c0_i32, %c0_i32_0 : i32, i32, i32
  }
}

</mosaic_0001>

<bundles_post_ra>
// kernel: tpu_custom_call.1
= control target key start
LH: loop header
LB: loop body
LE: loop exit
PB: predicated region body
PF: predicated region fallthrough
CT: control target
= control target key end

     0   :  { %14 = vsyncpa [#allocation3], 0  ;;  %v660_v2 = vmov 0   ;;  %vm76_vm0 = vcmask 261120   ;;  %s823_s0 = inlined_call_operand.vmem [shape: f32[2,8,32], index: 0, kind: input, shape index: {}]   ;;  %s824_s1 = inlined_call_operand.vmem [shape: bf16[32,256], index: 1, kind: input, shape index: {}]   ;;  %s825_s2 = inlined_call_operand.vmem [shape: f32[1,256], index: 2, kind: input, shape index: {}]   ;;  %s826_s3 = inlined_call_operand.vmem [shape: bf16[256,4], index: 3, kind: input, shape index: {}]   ;;  %s827_s4 = inlined_call_operand.vmem [shape: f32[1,4], index: 4, kind: input, shape index: {}]   ;;  %s828_s5 = inlined_call_operand.vmem [shape: bf16[4,32], index: 5, kind: input, shape index: {}]   ;;  %s829_s6 = inlined_call_operand.vmem [shape: f32[1,4], index: 6, kind: input, shape index: {}]   ;;  %s830_s7 = inlined_call_operand.hbm [shape: f32[2,4], index: 7, kind: output, shape index: {0}]   ;;  %s831_s8 = inlined_call_operand.hbm [shape: f32[2,4,8], index: 8, kind: output, shape index: {1}]  }
   0x1   :  { %v582_v0 = vld [vmem:[%s824_s1 + $0x4] ss:$8 sps:$4 sm:$0xff]   ;;  %v584_v1 = vld [vmem:[%s824_s1] ss:$8 sps:$4 sm:$0xff]   ;;  %112 = vmatprep.mubr.bf16.mxu0 %v660_v2  ;;  %v585_v3 = vld [vmem:[%s824_s1 + $0x14] ss:$8 sps:$4 sm:$0xff]  }
   0x2   :  { %80 = vmatprep.subr.bf16.mxu0 %v582_v0  ;;  %v587_v4 = vld [vmem:[%s824_s1 + $0x10] ss:$8 sps:$4 sm:$0xff]   ;;  %v31_v5 = vld [vmem:[%s823_s0] sm:$0xff]  ;;  %v32_v6 = vld [vmem:[%s823_s0 + $0x8] sm:$0xff] }
   0x3   :  { %81 = vmatpush1.bf16.msra.mxu0 %v584_v1  ;;  %v588_v7 = vld [vmem:[%s826_s3 + $0x40] sm:$0xff]   ;;  %v544_v9 = vpack.c.bf16 %v32_v6, %v31_v5  ;;  %v590_v10 = vld [vmem:[%s826_s3 + $0x48] sm:$0xff]   ;;  %v592_v12 = vld [vmem:[%s826_s3 + $0x50] sm:$0xff]  }
   0x4   :  { %82 = vmatprep.subr.bf16.mxu0 %v585_v3  ;;  %v589_v8 = vld [vmem:[%s826_s3] sm:$0xff]   ;;  %545 = vmatprep.subr.bf16.mxu1 %v588_v7  ;;  %v591_v11 = vld [vmem:[%s826_s3 + $0x8] sm:$0xff]   ;;  %v593_v13 = vld [vmem:[%s826_s3 + $0x10] sm:$0xff]  }
   0x5   :  { %546 = vmatpush3.bf16.msra.mxu1 %v589_v8  ;;  %v594_v14 = vld [vmem:[%s826_s3 + $0x58] sm:$0xff]   ;;  %v596_v16 = vld [vmem:[%s826_s3 + $0x60] sm:$0xff]  }
   0x6   :  { %547 = vmatprep.subr.bf16.mxu1 %v590_v10  ;;  %v595_v15 = vld [vmem:[%s826_s3 + $0x18] sm:$0xff]  }
   0x7   :  { %83 = vmatpush1.bf16.msra.mxu0 %v587_v4 }
   0x9   :  { %548 = vmatpush3.bf16.msra.mxu1 %v591_v11 }
   0xa   :  { %524 = vmatmul.mubr.msk.bf16.vlgmr.msra.gmra.mrb[0].mxu0 %vm76_vm0, %v544_v9  ;;  %549 = vmatprep.subr.bf16.mxu1 %v592_v12 }
   0xd   :  { %550 = vmatpush3.bf16.msra.mxu1 %v593_v13 }
   0xe   :  { %551 = vmatprep.subr.bf16.mxu1 %v594_v14 }
   0xf   :  { %15 = vsyncpa [#allocation5], 0  ;;  %v597_v17 = vld [vmem:[%s826_s3 + $0x20] sm:$0xff]   ;;  %v598_v18 = vld [vmem:[%s826_s3 + $0x68] sm:$0xff]   ;;  %v661_v25 = vmov 0.0   ;;  %vm662_vm1 = vmmov 0   ;;  %v41_v27 = vlaneseq }
  0x10   :  { %v599_v19 = vld [vmem:[%s826_s3 + $0x28] sm:$0xff]   ;;  %v600_v20 = vld [vmem:[%s826_s3 + $0x70] sm:$0xff]   ;;  %v602_v22 = vld [vmem:[%s826_s3 + $0x78] sm:$0xff]   ;;  %569 = vmatprep.subr.bf16.mxu0 %v661_v25  ;;  %571 = vmatprep.mubr.msk.bf16.mxu0 %vm662_vm1, %v661_v25  ;;  %vm305_vm2 = vcmask 31744   ;;  %s663_s27 = smov [#allocation2]   ;;  %vm417_vm3 = vcmask 1041409  }
  0x11   :  { %552 = vmatpush3.bf16.msra.mxu1 %v595_v15  ;;  %v601_v21 = vld [vmem:[%s826_s3 + $0x30] sm:$0xff]   ;;  %v603_v23 = vld [vmem:[%s826_s3 + $0x38] sm:$0xff]   ;;  %v344_v24 = vld [vmem:[%s828_s5] sm:$0x3]  ;;  %v42_v28 = vshrl.u32 %v41_v27, 7  ;;  %s495_s28 = sshll.u32 %s663_s27, 4  ;;  %s496_s28 = int_to_ptr.vmem [resolvable:$true] %s495_s28 }
  0x12   :  { %553 = vmatprep.subr.bf16.mxu1 %v596_v16  ;;  %v346_v26 = vsel %vm76_vm0, %v344_v24, 0  ;;  %v39_v30 = vld [vmem:[%s825_s2] sm:$0x3]  ;;  %vm420_vm4 = vcmask 25600   ;;  %s612_s29 = scalar_lea.vmem %s496_s28, 32  ;;  %p617_p1 = scmp.lt.s32.totalorder %s496_s28, %s496_s28 }
  0x13   :  { %570 = vmatpush3.bf16.xpose.msra.mxu0 %v346_v26  ;;  %v43_v29 = vsub.s32 0, %v42_v28  ;;  %v47_v31 = vsub.s32 1, %v42_v28  ;;  %v525_v53 = vld [vmem:[%s827_s4] ss:$0 sm:$0xff]  ;;  %p613_p0 = scmp.ne.s32.totalorder %s496_s28, %s612_s29  ;;  %p618_p2 = scmp.lt.s32.totalorder %s612_s29, %s612_s29 }
  0x15   :  { %554 = vmatpush3.bf16.msra.mxu1 %v597_v17  ;;  %v44_v32 = vrot.slane %v39_v30, %v43_v29  ;;  %v48_v33 = vrot.slane %v39_v30, %v47_v31  ;;  %p619_p3 = por %p618_p2, %p617_p1 }
  0x16   :  { %555 = vmatprep.subr.bf16.mxu1 %v598_v18 }
  0x17   :  { %p620_p4 = pnand %p619_p3, %p613_p0 }
  0x19   :  { %556 = vmatpush3.bf16.msra.mxu1 %v599_v19 }
  0x1a   :  { %557 = vmatprep.subr.bf16.mxu1 %v600_v20  ;;  %572 = vmatmul.mubr.msk.bf16.vlgmr.msra.gmra.mrb[4].mxu0 %vm76_vm0, %v544_v9 }
  0x1d   :  { %558 = vmatpush3.bf16.msra.mxu1 %v601_v21 }
  0x1e   :  { %559 = vmatprep.subr.bf16.mxu1 %v602_v22 }
  0x21   :  { %560 = vmatpush3.bf16.msra.mxu1 %v603_v23 }
  0xdd   :  { %v114_v34 = vpop.f32.mrb[0].mxu0 }
  0xde   :  { %v115_v35 = vadd.f32 %v114_v34, %v44_v32  ;;  %v116_v36 = vpop.f32.mrb[1].mxu0 }
  0xdf   :  { %v117_v37 = vadd.f32 %v116_v36, %v48_v33  ;;  %v118_v38 = vpop.f32.mrb[2].mxu0 }
  0xe0   :  { %v119_v39 = vadd.f32 %v118_v38, %v44_v32  ;;  %v120_v40 = vpop.f32.mrb[3].mxu0  ;;  %v123_v42 = vmax.f32 %v115_v35, 0.0 }
  0xe1   :  { %v121_v41 = vadd.f32 %v120_v40, %v48_v33  ;;  %v124_v44 = vmax.f32 %v117_v37, 0.0 }
  0xe2   :  { %v125_v43 = vmax.f32 %v119_v39, 0.0 }
  0xe3   :  { %v126_v45 = vmax.f32 %v121_v41, 0.0 }
  0xe4   :  { %v127_v46 = vpack.c.bf16 %v125_v43, %v123_v42 }
  0xe5   :  { %v128_v47 = vpack.c.bf16 %v126_v45, %v124_v44 }
  0xe7   :  { %296 = vmatprep.mubr.bf16.mxu1 %v128_v47 }
  0xe8   :  { %297 = vmatmul.mubr.bf16.vlgmr.msra.gmra.mrb[0].mxu1 %v127_v46 }
  0xed   :  { %v382_v48 = vpop.f32.mrb[4].mxu0 }
  0xee   :  { %v573_v49 = vpop.f32.mrb[5].mxu0 }
  0xef   :  { %v385_v50 = vpop.f32.mrb[6].mxu0 }
  0xf0   :  { %v574_v51 = vpop.f32.mrb[7].mxu0 }
 0x1bb   :  { %v561_v52 = vpop.f32.mrb[0].mxu1 }
 0x1bc   :  { %v562_v54 = vpop.f32.mrb[1].mxu1 }
 0x1bd   :  { %v563_v55 = vadd.f32 %v562_v54, %v561_v52  ;;  %v564_v56 = vpop.f32.mrb[2].mxu1  ;;  %v543_v52 = vld [vmem:[%s829_s6] ss:$0 sm:$0xff] }
 0x1be   :  { %v565_v57 = vpop.f32.mrb[3].mxu1 }
 0x1bf   :  { %v299_v58 = vadd.f32 %v563_v55, %v525_v53  ;;  %v566_v59 = vadd.f32 %v565_v57, %v564_v56 }
 0x1c1   :  { %v306_v60 = vsel %vm305_vm2, %v299_v58, -inf  ;;  %v302_v61 = vadd.f32 %v566_v59, %v525_v53 }
 0x1c2   :  { %v307_v62 = vrot.slane %v306_v60, 4 }
 0x1c3   :  { %v313_v63 = vsel %vm305_vm2, %v302_v61, -inf }
 0x1c4   :  { %v308_v0 = vmax.f32 %v306_v60, %v307_v62  ;;  %v314_v1 = vrot.slane %v313_v63, 4 }
 0x1c6   :  { %v309_v2 = vrot.slane %v308_v0, 2  ;;  %v315_v3 = vmax.f32 %v313_v63, %v314_v1 }
 0x1c8   :  { %v310_v4 = vmax.f32 %v308_v0, %v309_v2  ;;  %v316_v5 = vrot.slane %v315_v3, 2 }
 0x1ca   :  { %v311_v6 = vrot.slane %v310_v4, 1  ;;  %v317_v7 = vmax.f32 %v315_v3, %v316_v5 }
 0x1cc   :  { %v312_v8 = vmax.f32 %v310_v4, %v311_v6  ;;  %v318_v9 = vrot.slane %v317_v7, 1 }
 0x1ce   :  { %v320_v10 = vsub.f32 %v299_v58, %v312_v8  ;;  %v319_v11 = vmax.f32 %v317_v7, %v318_v9 }
 0x1d0   :  { %v322_v12 = vmul.f32 1.442695, %v320_v10  ;;  %v321_v13 = vsub.f32 %v302_v61, %v319_v11 }
 0x1d2   :  { %604 = vpow2.f32 %v322_v12  ;;  %v324_v14 = vmul.f32 1.442695, %v321_v13 }
 0x1d4   :  { %606 = vpow2.f32 %v324_v14 }
 0x1dc   :  { %v605_v15 = vpop.eup %604 }
 0x1dd   :  { %v326_v16 = vsel %vm305_vm2, %v605_v15, 0.0 }
 0x1de   :  { %v607_v17 = vpop.eup %606  ;;  %v327_v18 = vrot.slane %v326_v16, 4 }
 0x1df   :  { %v333_v19 = vsel %vm305_vm2, %v607_v17, 0.0 }
 0x1e0   :  { %v328_v20 = vadd.f32 %v327_v18, %v326_v16  ;;  %v334_v21 = vrot.slane %v333_v19, 4 }
 0x1e2   :  { %v335_v22 = vadd.f32 %v334_v21, %v333_v19  ;;  %v329_v23 = vrot.slane %v328_v20, 2 }
 0x1e4   :  { %v330_v24 = vadd.f32 %v329_v23, %v328_v20  ;;  %v336_v25 = vrot.slane %v335_v22, 2 }
 0x1e6   :  { %v331_v26 = vrot.slane %v330_v24, 1  ;;  %v337_v27 = vadd.f32 %v336_v25, %v335_v22 }
 0x1e8   :  { %v332_v28 = vadd.f32 %v331_v26, %v330_v24  ;;  %v338_v29 = vrot.slane %v337_v27, 1 }
 0x1ea   :  { %608 = vrcp.f32 %v332_v28  ;;  %v339_v30 = vadd.f32 %v338_v29, %v337_v27 }
 0x1ec   :  { %610 = vrcp.f32 %v339_v30 }
 0x1f4   :  { %v609_v31 = vpop.eup %608 }
 0x1f5   :  { %v342_v32 = vmul.f32 %v609_v31, %v605_v15 }
 0x1f6   :  { %v611_v33 = vpop.eup %610 }
 0x1f7   :  { %v389_v34 = vmul.f32 %v382_v48, %v342_v32  ;;  %422 = vxpose.xlu0.b32.start.end [1/1] (short) (narrow) %v342_v32, 8  ;;  %v343_v35 = vmul.f32 %v611_v33, %v607_v17 }
 0x1f9   :  { %v391_v36 = vsel %vm305_vm2, %v389_v34, 0.0  ;;  %v390_v37 = vmul.f32 %v385_v50, %v343_v35 }
 0x1fa   :  { %v392_v38 = vrot.slane %v391_v36, 4 }
 0x1fb   :  { %v398_v39 = vsel %vm305_vm2, %v390_v37, 0.0  ;;  %454 = vxpose.xlu0.b32.start.end [1/1] (short) (narrow) %v343_v35, 8 }
 0x1fc   :  { %v393_v40 = vadd.f32 %v392_v38, %v391_v36  ;;  %v399_v41 = vrot.slane %v398_v39, 4 }
 0x1fe   :  { %v394_v42 = vrot.slane %v393_v40, 2  ;;  %v400_v43 = vadd.f32 %v399_v41, %v398_v39 }
 0x200   :  { %v395_v44 = vadd.f32 %v394_v42, %v393_v40  ;;  %v401_v45 = vrot.slane %v400_v43, 2 }
 0x202   :  { %v396_v46 = vrot.slane %v395_v44, 1  ;;  %v402_v47 = vadd.f32 %v401_v45, %v400_v43 }
 0x204   :  { %v403_v49 = vrot.slane %v402_v47, 1  ;;  %v397_v51 = vadd.f32 %v396_v46, %v395_v44 }
 0x206   :  { %v404_v48 = vadd.f32 %v403_v49, %v402_v47  ;;  %v412_v53 = vadd.f32 %v543_v52, %v397_v51 }
 0x208   :  { %v413_v50 = vadd.f32 %v543_v52, %v404_v48 }
 0x20a   :  { %v416_v54 = vrot.slane %v413_v50, 7 }
 0x20c   :  { %v418_v55 = vsel %vm417_vm3, %v416_v54, %v412_v53 }
 0x20d   :  { %421 = vst.msk [vmem:[#allocation2] sm:$0x3] %vm420_vm4, %v418_v55 }
 0x20e   :  { %623 = shalt.err (!%p620_p4)
}
 0x20f   :  { %s624_s6 = scalar_lea.hbm %s830_s7, 32 }
 0x210   :  { %p625_p5 = scmp.ne.s32.totalorder %s830_s7, %s624_s6  ;;  %p628_p6 = scmp.lt.u32.totalorder %s624_s6, %s830_s7 }
 0x212   :  { %p630_p7 = pnand %p628_p6, %p625_p5 }
 0x214   :  { %633 = shalt.err (!%p630_p7)
}
 0x215   :  { %498 = dma.vmem_to_hbm [thread:$0]  %s496_s28, 32, %s830_s7, [#allocation3]   ;;  %vm486_vm5 = vcmask 60416  }
 0x216   :  { %s664_s16 = smov [#allocation4]  }
 0x217   :  { %s504_s17 = sshll.u32 %s664_s16, 4  ;;  %s505_s17 = int_to_ptr.vmem [resolvable:$true] %s504_s17 }
 0x218   :  { %s634_s18 = scalar_lea.vmem %s505_s17, 128  ;;  %p639_p9 = scmp.lt.s32.totalorder %s505_s17, %s505_s17 }
 0x219   :  { %p635_p8 = scmp.ne.s32.totalorder %s505_s17, %s634_s18  ;;  %p640_p10 = scmp.lt.s32.totalorder %s634_s18, %s634_s18 }
 0x21b   :  { %p641_p11 = por %p640_p10, %p639_p9 }
 0x21d   :  { %p642_p12 = pnand %p641_p11, %p635_p8 }
 0x277   :  { %v438_v56 = vpop.trf.xlu0 }
 0x278   :  { %487 = vst.msk [vmem:[#allocation4] sm:$0xf] %vm486_vm5, %v438_v56 }
 0x27b   :  { %v470_v57 = vpop.trf.xlu0 }
 0x27c   :  { %488 = vst.msk [vmem:[#allocation4 + $0x4] sm:$0xf] %vm486_vm5, %v470_v57 }
 0x27d   :  { %645 = shalt.err (!%p642_p12)
}
 0x27e   :  { %s646_s1 = scalar_lea.hbm %s831_s8, 128 }
 0x27f   :  { %p647_p13 = scmp.ne.s32.totalorder %s831_s8, %s646_s1  ;;  %p650_p0 = scmp.lt.u32.totalorder %s646_s1, %s831_s8 }
 0x281   :  { %p652_p1 = pnand %p650_p0, %p647_p13 }
 0x283   :  { %655 = shalt.err (!%p652_p1)
}
 0x284   :  { %s665_s23 = smov 64   ;;  %s666_s24 = smov 4  }
 0x285   :  { %510 = dma.vmem_to_hbm [thread:$0]  %s505_s17, 128, %s831_s8, [#allocation5], %s665_s23, %s665_s23, %s666_s24  }
 0x286   :  { %656 = dma.done.wait [#allocation3], 32  }
 0x287   :  { %657 = vsyncadd [#allocation3], 4294967264 }
 0x288   :  { %658 = dma.done.wait [#allocation5], 128  }
 0x289   :  { %659 = vsyncadd [#allocation5], 4294967168 }
 0x28a   :  { %517 = vsyncpa [#allocation3], 1 }
 0x28b   :  { %518 = vsyncpa [#allocation5], 1 }

</bundles_post_ra>
